<compile_context>
chip_gen: v7x
topology: tpu7x:2x2x1
jax: 0.10.0
libtpu: 0.0.40
codegen_flags: <defaults>
</compile_context>

<pallas_src>
import functools

import jax
import jax.numpy as jnp
from jax.experimental import pallas as pl
from jax.experimental.pallas import tpu as pltpu

_LANES = 128
_SUBLANES = 8
_CHUNK = _SUBLANES * _LANES          # 1024-element alignment unit


def _stable_bce_with_logits(x, t):
    # PyTorch's numerically stable form: max(x,0) - x*t + log1p(exp(-|x|)).
    return jnp.maximum(x, 0.0) - x * t + jnp.log1p(jnp.exp(-jnp.abs(x)))


# --------------------------------------------------------------------------
# Kernels
# --------------------------------------------------------------------------
def _bce_elementwise_kernel(x_ref, t_ref, o_ref, *, loss_weight):
    x = x_ref[...].astype(jnp.float32)
    t = t_ref[...].astype(jnp.float32)
    loss = _stable_bce_with_logits(x, t)
    if loss_weight != 1.0:
        loss = loss_weight * loss
    o_ref[...] = loss.astype(o_ref.dtype)


def _bce_reduce_kernel(x_ref, t_ref, o_ref, acc_ref, *,
                       rows_total, blocks_per_core):
    c = pl.program_id(0)      # core-split index (CORE_PARALLEL on v7x)
    i = pl.program_id(1)      # reduction step within this core's share

    @pl.when(i == 0)
    def _():
        acc_ref[...] = jnp.zeros_like(acc_ref)

    x = x_ref[...].astype(jnp.float32)
    t = t_ref[...].astype(jnp.float32)
    loss = _stable_bce_with_logits(x, t)

    tile_rows = x_ref.shape[0]
    # Logical (un-clamped) block index -> rows of the block that are valid.
    # Row-index masking (not element-index) avoids int32 overflow even for
    # very large tensors.
    b = c * blocks_per_core + i
    rows_here = rows_total - b * tile_rows

    @pl.when(rows_here >= tile_rows)
    def _():
        # Interior block: plain elementwise vreg adds, no mask arithmetic.
        acc_ref[...] += loss.reshape(-1, _SUBLANES, _LANES).sum(axis=0)

    @pl.when(rows_here < tile_rows)
    def _():
        # Boundary block (partial) or clamped duplicate (rows_here <= 0).
        ridx = jax.lax.broadcasted_iota(jnp.int32, loss.shape, 0)
        masked = jnp.where(ridx < rows_here, loss, 0.0)
        acc_ref[...] += masked.reshape(-1, _SUBLANES, _LANES).sum(axis=0)

    @pl.when(i == pl.num_programs(1) - 1)
    def _():
        o_ref[...] = acc_ref[...]


# --------------------------------------------------------------------------
# Host-side helpers
# --------------------------------------------------------------------------
@functools.lru_cache(maxsize=1)
def _device_profile():
    """(per-stream block bytes, core splits, is_v7x) for the local TPU."""
    try:
        kind = jax.devices()[0].device_kind.lower()
    except Exception:  # pragma: no cover - defensive
        kind = ""
    is_v5e = ("v5 lite" in kind) or ("v5e" in kind) or ("v5litepod" in kind)
    is_v7x = ("tpu7" in kind) or ("v7" in kind) or ("tpu 7" in kind)
    # ~4 MiB blocks on v6e/v7x (fits 32 MiB default scoped VMEM with double
    # buffering of 3 streams); ~2 MiB on v5e (16 MiB default scoped VMEM).
    block_bytes = (2 << 20) if is_v5e else (4 << 20)
    # Only v7x has two TensorCores per chip; elsewhere the split is dead work.
    num_splits = 2 if is_v7x else 1
    return block_bytes, num_splits, is_v7x


def _pick_tile_rows(rows, block_bytes, *dtypes):
    """Rows per block: ~block_bytes per stream, dtype-tile aligned."""
    itemsize = max(jnp.dtype(d).itemsize for d in dtypes)
    sub = max(8, max(32 // jnp.dtype(d).itemsize for d in dtypes))
    cand = max(sub, (block_bytes // (_LANES * itemsize)) // sub * sub)
    # rows is always a multiple of 8; using the full dim is always legal.
    return rows if rows <= cand else cand


@functools.partial(jax.jit, static_argnames=("reduction", "loss_weight"))
def _bce_loss_impl(logits, target, *, reduction, loss_weight):
    out_dtype = jnp.result_type(logits.dtype, target.dtype)
    flat_x = logits.reshape(-1)
    flat_t = target.reshape(-1)
    n = flat_x.shape[0]

    if n == 0:
        if reduction == "none":
            return jnp.zeros(logits.shape, out_dtype)
        return jnp.zeros((), out_dtype)

    n_main = (n // _CHUNK) * _CHUNK          # 1024-aligned prefix
    rows = n_main // _LANES                  # multiple of 8
    block_bytes, num_splits, _ = _device_profile()

    # <1024-element unaligned tail handled in pure JAX (no full-array pad).
    if n_main < n:
        tail = _stable_bce_with_logits(flat_x[n_main:].astype(jnp.float32),
                                       flat_t[n_main:].astype(jnp.float32))
    else:
        tail = None

    x_main = flat_x if n_main == n else flat_x[:n_main]
    t_main = flat_t if n_main == n else flat_t[:n_main]

    # ---------------------------------------------------------------- 'none'
    if reduction == "none":
        if rows == 0:
            out = (loss_weight * tail).astype(out_dtype)
            return out.reshape(logits.shape)

        x2d = x_main.reshape(rows, _LANES)
        t2d = t_main.reshape(rows, _LANES)
        tile_rows = _pick_tile_rows(rows, block_bytes,
                                    logits.dtype, target.dtype, out_dtype)
        nblocks = pl.cdiv(rows, tile_rows)

        out2d = pl.pallas_call(
            functools.partial(_bce_elementwise_kernel,
                              loss_weight=float(loss_weight)),
            out_shape=jax.ShapeDtypeStruct((rows, _LANES), out_dtype),
            grid_spec=pltpu.PrefetchScalarGridSpec(
                num_scalar_prefetch=0,
                grid=(nblocks,),
                in_specs=[
                    pl.BlockSpec((tile_rows, _LANES), lambda i: (i, 0)),
                    pl.BlockSpec((tile_rows, _LANES), lambda i: (i, 0)),
                ],
                out_specs=pl.BlockSpec((tile_rows, _LANES), lambda i: (i, 0)),
            ),
            compiler_params=pltpu.CompilerParams(
                dimension_semantics=("parallel",)),
        )(x2d, t2d)

        out_flat = out2d.reshape(-1)
        if tail is not None:
            tail_out = (loss_weight * tail).astype(out_dtype)
            out_flat = jnp.concatenate([out_flat, tail_out])
        return out_flat.reshape(logits.shape)

    # ---------------------------------------------------------- 'mean'/'sum'
    tail_sum = jnp.sum(tail) if tail is not None else jnp.float32(0.0)

    if rows == 0:
        total = tail_sum
    else:
        x2d = x_main.reshape(rows, _LANES)
        t2d = t_main.reshape(rows, _LANES)
        tile_rows = _pick_tile_rows(rows, block_bytes,
                                    logits.dtype, target.dtype)
        nblocks = pl.cdiv(rows, tile_rows)
        blocks_per_core = pl.cdiv(nblocks, num_splits)

        if num_splits == 1:
            # Single TensorCore: no clamp, no duplicated block possible.
            def block_map(c, i):
                return (i, 0)
            dim_sems = ("arbitrary", "arbitrary")
        else:
            last_block = nblocks - 1

            def block_map(c, i):
                # Clamp so the DMA never runs past the array; the in-kernel
                # row mask zeroes the duplicated block's contribution.
                return (jnp.minimum(c * blocks_per_core + i, last_block), 0)
            # Engage both v7x TensorCores on the leading split axis.
            dim_sems = (pltpu.CORE_PARALLEL, pltpu.ARBITRARY)

        partials = pl.pallas_call(
            functools.partial(_bce_reduce_kernel, rows_total=rows,
                              blocks_per_core=blocks_per_core),
            out_shape=jax.ShapeDtypeStruct(
                (num_splits * _SUBLANES, _LANES), jnp.float32),
            grid_spec=pltpu.PrefetchScalarGridSpec(
                num_scalar_prefetch=0,
                grid=(num_splits, blocks_per_core),
                in_specs=[
                    pl.BlockSpec((tile_rows, _LANES), block_map),
                    pl.BlockSpec((tile_rows, _LANES), block_map),
                ],
                out_specs=pl.BlockSpec((_SUBLANES, _LANES),
                                       lambda c, i: (c, 0)),
                scratch_shapes=[pltpu.VMEM((_SUBLANES, _LANES), jnp.float32)],
            ),
            compiler_params=pltpu.CompilerParams(
                dimension_semantics=dim_sems),
        )(x2d, t2d)
        total = jnp.sum(partials) + tail_sum

    if reduction == "mean":
        total = total / n
    return (jnp.float32(loss_weight) * total).astype(out_dtype)


class BCELoss:
    """JAX/Pallas port of the PyTorch BCELoss module (BCE *with logits*)."""

    def __init__(self, reduction="mean", loss_weight=1.0):
        self.reduction = reduction
        self.loss_weight = float(loss_weight)

    def __call__(self, input, target, reduction_override=None, **kwargs):
        assert reduction_override in (None, "none", "mean", "sum")
        # TODO(synk): per-element `weight` / `pos_weight` kwargs of
        # F.binary_cross_entropy_with_logits are not implemented.
        assert not kwargs, "weight/pos_weight kwargs are not supported"
        reduction = reduction_override if reduction_override else self.reduction
        return _bce_loss_impl(input, target, reduction=reduction,
                              loss_weight=self.loss_weight)


if __name__ == "__main__":
    key = jax.random.PRNGKey(0)
    k1, k2, k3, k4 = jax.random.split(key, 4)

    def ref_elementwise(x, t):
        x = x.astype(jnp.float32)
        t = t.astype(jnp.float32)
        return jnp.maximum(x, 0.0) - x * t + jnp.log1p(jnp.exp(-jnp.abs(x)))

    loss_mod = BCELoss(reduction="mean", loss_weight=1.0)

    # Aligned NCHW-like shape: batch=2, channels=4, spatial=16x16.
    logits = jax.random.normal(k1, (2, 4, 16, 16), dtype=jnp.float32)
    target = (jax.random.uniform(k2, (2, 4, 16, 16)) > 0.5).astype(jnp.float32)
    ref = ref_elementwise(logits, target)

    out_mean = jax.block_until_ready(loss_mod(logits, target))
    assert jnp.allclose(out_mean, jnp.mean(ref), rtol=1e-5, atol=1e-6)

    out_sum = jax.block_until_ready(
        loss_mod(logits, target, reduction_override="sum"))
    assert jnp.allclose(out_sum, jnp.sum(ref), rtol=1e-5, atol=1e-4)

    out_none = jax.block_until_ready(
        loss_mod(logits, target, reduction_override="none"))
    assert out_none.shape == logits.shape
    assert jnp.allclose(out_none, ref, rtol=1e-5, atol=1e-6)

    # Unaligned numel (3*5*7*11 = 1155): exercises aligned-prefix + JAX tail.
    logits_u = jax.random.normal(k3, (3, 5, 7, 11), dtype=jnp.float32)
    target_u = (jax.random.uniform(k4, (3, 5, 7, 11)) > 0.5).astype(jnp.float32)
    ref_u = ref_elementwise(logits_u, target_u)

    out_u_mean = jax.block_until_ready(loss_mod(logits_u, target_u))
    assert jnp.allclose(out_u_mean, jnp.mean(ref_u), rtol=1e-5, atol=1e-6)
    out_u_none = jax.block_until_ready(
        loss_mod(logits_u, target_u, reduction_override="none"))
    assert jnp.allclose(out_u_none, ref_u, rtol=1e-5, atol=1e-6)

    # bf16 inputs: dtype-aware tile sizing path (result is bf16 -> loose tol).
    logits_b = logits.astype(jnp.bfloat16)
    target_b = target.astype(jnp.bfloat16)
    ref_b = jnp.mean(ref_elementwise(logits_b, target_b))
    out_b = jax.block_until_ready(loss_mod(logits_b, target_b))
    assert jnp.allclose(jnp.float32(out_b), ref_b, rtol=2e-2, atol=1e-3)

    print("KERNEL_OK")
</pallas_src>

<mosaic_0001>
module attributes {stable_mosaic.version = 11 : i64} {
  func.func @_bce_reduce_kernel(%arg0: i32, %arg1: i32, %arg2: memref<16x128xf32, #tpu.memory_space<vmem>>, %arg3: memref<16x128xf32, #tpu.memory_space<vmem>>, %arg4: memref<8x128xf32, #tpu.memory_space<vmem>>, %arg5: memref<8x128xf32, #tpu.memory_space<vmem>>) attributes {dimension_semantics = [#tpu.dimension_semantics<arbitrary>, #tpu.dimension_semantics<arbitrary>], iteration_bounds = array<i64: 1, 1>, scalar_prefetch = 0 : i64, scratch_operands = 1 : i64, tpu.core_type = #tpu.core_type<tc>, window_params = [{transform_indices = @transform_0, window_bounds = array<i64: 16, 128>}, {transform_indices = @transform_1, window_bounds = array<i64: 16, 128>}, {transform_indices = @transform_2, window_bounds = array<i64: 8, 128>}]} {
    %c0_i32 = arith.constant 0 : i32
    %0 = arith.cmpi eq, %arg1, %c0_i32 : i32
    %1 = arith.extui %0 : i1 to i32
    %c0_i32_0 = arith.constant 0 : i32
    %2 = arith.cmpi ne, %1, %c0_i32_0 : i32
    scf.if %2 {
      %cst_12 = arith.constant 0.000000e+00 : f32
      %28 = vector.broadcast %cst_12 : f32 to vector<8x128xf32>
      %c0_13 = arith.constant 0 : index
      %c0_14 = arith.constant 0 : index
      %29 = vector.load %arg5[%c0_13, %c0_14] : memref<8x128xf32, #tpu.memory_space<vmem>>, vector<8x128xf32>
      tpu.vector_store %arg5[%c0_13, %c0_14], %28 {strides = array<i32>} : memref<8x128xf32, #tpu.memory_space<vmem>>, vector<8x128xf32>,
    } else {
    }
    %c0 = arith.constant 0 : index
    %c0_1 = arith.constant 0 : index
    %3 = vector.load %arg2[%c0, %c0_1] : memref<16x128xf32, #tpu.memory_space<vmem>>, vector<16x128xf32>
    %c0_2 = arith.constant 0 : index
    %c0_3 = arith.constant 0 : index
    %4 = vector.load %arg3[%c0_2, %c0_3] : memref<16x128xf32, #tpu.memory_space<vmem>>, vector<16x128xf32>
    %cst = arith.constant 0.000000e+00 : f32
    %5 = vector.broadcast %cst : f32 to vector<16x128xf32>
    %6 = arith.maximumf %3, %5 : vector<16x128xf32>
    %7 = arith.mulf %3, %4 : vector<16x128xf32>
    %8 = arith.subf %6, %7 : vector<16x128xf32>
    %9 = math.absf %3 : vector<16x128xf32>
    %cst_4 = arith.constant 0.000000e+00 : f32
    %10 = vector.broadcast %cst_4 : f32 to vector<16x128xf32>
    %11 = arith.subf %10, %9 : vector<16x128xf32>
    %12 = math.exp %11 : vector<16x128xf32>
    %13 = math.log1p %12 : vector<16x128xf32>
    %14 = arith.addf %8, %13 : vector<16x128xf32>
    %c1_i32 = arith.constant 1 : i32
    %15 = arith.muli %arg0, %c1_i32 : i32
    %16 = arith.addi %15, %arg1 : i32
    %c16_i32 = arith.constant 16 : i32
    %17 = arith.muli %16, %c16_i32 : i32
    %c16_i32_5 = arith.constant 16 : i32
    %18 = arith.subi %c16_i32_5, %17 : i32
    %c16_i32_6 = arith.constant 16 : i32
    %19 = arith.cmpi sge, %18, %c16_i32_6 : i32
    %20 = arith.extui %19 : i1 to i32
    %c0_i32_7 = arith.constant 0 : i32
    %21 = arith.cmpi ne, %20, %c0_i32_7 : i32
    scf.if %21 {
      %c0_12 = arith.constant 0 : index
      %c0_13 = arith.constant 0 : index
      %28 = vector.load %arg5[%c0_12, %c0_13] : memref<8x128xf32, #tpu.memory_space<vmem>>, vector<8x128xf32>
      %29 = vector.shape_cast %14 : vector<16x128xf32> to vector<2x8x128xf32>
      %cst_14 = arith.constant dense<0.000000e+00> : vector<8x128xf32>
      %30 = vector.multi_reduction <add>, %29, %cst_14 [0] : vector<2x8x128xf32> to vector<8x128xf32>
      %31 = arith.addf %28, %30 : vector<8x128xf32>
      %c0_15 = arith.constant 0 : index
      %c0_16 = arith.constant 0 : index
      %32 = vector.load %arg5[%c0_15, %c0_16] : memref<8x128xf32, #tpu.memory_space<vmem>>, vector<8x128xf32>
      tpu.vector_store %arg5[%c0_15, %c0_16], %31 {strides = array<i32>} : memref<8x128xf32, #tpu.memory_space<vmem>>, vector<8x128xf32>,
    } else {
    }
    %c16_i32_8 = arith.constant 16 : i32
    %22 = arith.cmpi slt, %18, %c16_i32_8 : i32
    %23 = arith.extui %22 : i1 to i32
    %c0_i32_9 = arith.constant 0 : i32
    %24 = arith.cmpi ne, %23, %c0_i32_9 : i32
    scf.if %24 {
      %28 = tpu.iota {dimensions = array<i32: 0>} : vector<16x128xi32>
      %29 = vector.broadcast %18 : i32 to vector<16x128xi32>
      %30 = arith.cmpi slt, %28, %29 : vector<16x128xi32>
      %cst_12 = arith.constant 0.000000e+00 : f32
      %31 = vector.broadcast %cst_12 : f32 to vector<16x128xf32>
      %32 = arith.select %30, %14, %31 : vector<16x128xi1>, vector<16x128xf32>
      %c0_13 = arith.constant 0 : index
      %c0_14 = arith.constant 0 : index
      %33 = vector.load %arg5[%c0_13, %c0_14] : memref<8x128xf32, #tpu.memory_space<vmem>>, vector<8x128xf32>
      %34 = vector.shape_cast %32 : vector<16x128xf32> to vector<2x8x128xf32>
      %cst_15 = arith.constant dense<0.000000e+00> : vector<8x128xf32>
      %35 = vector.multi_reduction <add>, %34, %cst_15 [0] : vector<2x8x128xf32> to vector<8x128xf32>
      %36 = arith.addf %33, %35 : vector<8x128xf32>
      %c0_16 = arith.constant 0 : index
      %c0_17 = arith.constant 0 : index
      %37 = vector.load %arg5[%c0_16, %c0_17] : memref<8x128xf32, #tpu.memory_space<vmem>>, vector<8x128xf32>
      tpu.vector_store %arg5[%c0_16, %c0_17], %36 {strides = array<i32>} : memref<8x128xf32, #tpu.memory_space<vmem>>, vector<8x128xf32>,
    } else {
    }
    %c0_i32_10 = arith.constant 0 : i32
    %25 = arith.cmpi eq, %arg1, %c0_i32_10 : i32
    %26 = arith.extui %25 : i1 to i32
    %c0_i32_11 = arith.constant 0 : i32
    %27 = arith.cmpi ne, %26, %c0_i32_11 : i32
    scf.if %27 {
      %c0_12 = arith.constant 0 : index
      %c0_13 = arith.constant 0 : index
      %28 = vector.load %arg5[%c0_12, %c0_13] : memref<8x128xf32, #tpu.memory_space<vmem>>, vector<8x128xf32>
      %c0_14 = arith.constant 0 : index
      %c0_15 = arith.constant 0 : index
      %29 = vector.load %arg4[%c0_14, %c0_15] : memref<8x128xf32, #tpu.memory_space<vmem>>, vector<8x128xf32>
      tpu.vector_store %arg4[%c0_14, %c0_15], %28 {strides = array<i32>} : memref<8x128xf32, #tpu.memory_space<vmem>>, vector<8x128xf32>,
    } else {
    }
    return
  }
  func.func @transform_0(%arg0: i32, %arg1: i32) -> (i32, i32) {
    %c0_i32 = arith.constant 0 : i32
    %c0_i32_0 = arith.constant 0 : i32
    return %arg1, %c0_i32 : i32, i32
  }
  func.func @transform_1(%arg0: i32, %arg1: i32) -> (i32, i32) {
    %c0_i32 = arith.constant 0 : i32
    %c0_i32_0 = arith.constant 0 : i32
    return %arg1, %c0_i32 : i32, i32
  }
  func.func @transform_2(%arg0: i32, %arg1: i32) -> (i32, i32) {
    %c0_i32 = arith.constant 0 : i32
    %c0_i32_0 = arith.constant 0 : i32
    return %arg0, %c0_i32 : i32, i32
  }
}

</mosaic_0001>

<bundles_post_ra>
// kernel: _bce_loss_impl.1
= control target key start
LH: loop header
LB: loop body
LE: loop exit
PB: predicated region body
PF: predicated region fallthrough
CT: control target
= control target key end

     0   :  { %s128_s0 = inlined_call_operand.vmem [shape: f32[16,128], index: 0, kind: input, shape index: {}]   ;;  %s129_s1 = inlined_call_operand.vmem [shape: f32[16,128], index: 1, kind: input, shape index: {}]   ;;  %s130_s2 = inlined_call_operand.vmem [shape: f32[8,128], index: 2, kind: output, shape index: {}]  }
   0x1   :  { %v16_v0 = vld [vmem:[%s128_s0] sm:$0xff]  ;;  %v17_v1 = vld [vmem:[%s128_s0 + $0x8] sm:$0xff] }
   0x2   :  { %v26_v2 = vand.u32 2147483647, %v16_v0  ;;  %v27_v3 = vand.u32 2147483647, %v17_v1  ;;  %v18_v14 = vld [vmem:[%s129_s1] sm:$0xff]  ;;  %v19_v15 = vld [vmem:[%s129_s1 + $0x8] sm:$0xff] }
   0x3   :  { %v20_v17 = vmax.f32 %v16_v0, 0.0  ;;  %v22_v18 = vmul.f32 %v18_v14, %v16_v0  ;;  %v21_v21 = vmax.f32 %v17_v1, 0.0  ;;  %v23_v22 = vmul.f32 %v19_v15, %v17_v1 }
   0x4   :  { %v28_v4 = vsub.f32 0.0, %v26_v2  ;;  %v29_v5 = vsub.f32 0.0, %v27_v3 }
   0x5   :  { %v24_v26 = vsub.f32 %v20_v17, %v22_v18  ;;  %v25_v29 = vsub.f32 %v21_v21, %v23_v22 }
   0x6   :  { %v30_v6 = vmul.f32 1.442695, %v28_v4  ;;  %v32_v7 = vmul.f32 1.442695, %v29_v5 }
   0x8   :  { %90 = vpow2.f32 %v30_v6 }
   0x9   :  { %92 = vpow2.f32 %v32_v7 }
  0x12   :  { %v91_v8 = vpop.eup %90 }
  0x13   :  { %v93_v9 = vpop.eup %92  ;;  %v34_v10 = vadd.f32 1.0, %v91_v8  ;;  %v37_v12 = vmul.f32 -0.5, %v91_v8  ;;  %v40_v19 = vand.u32 2147483647, %v91_v8 }
  0x14   :  { %v43_v11 = vadd.f32 1.0, %v93_v9  ;;  %v46_v13 = vmul.f32 -0.5, %v93_v9  ;;  %v49_v23 = vand.u32 2147483647, %v93_v9 }
  0x15   :  { %94 = vlog2.f32 %v34_v10  ;;  %v38_v16 = vadd.f32 1.0, %v37_v12  ;;  %vm41_vm0 = vcmp.lt.f32.partialorder %v40_v19, 0.0004427343 }
  0x16   :  { %96 = vlog2.f32 %v43_v11  ;;  %v47_v20 = vadd.f32 1.0, %v46_v13  ;;  %vm50_vm1 = vcmp.lt.f32.partialorder %v49_v23, 0.0004427343 }
  0x17   :  { %v39_v24 = vmul.f32 %v91_v8, %v38_v16 }
  0x18   :  { %v48_v27 = vmul.f32 %v93_v9, %v47_v20 }
  0x1f   :  { %v95_v25 = vpop.eup %94 }
  0x20   :  { %v97_v28 = vpop.eup %96  ;;  %v36_v30 = vmul.f32 0.6931472, %v95_v25 }
  0x21   :  { %v45_v31 = vmul.f32 0.6931472, %v97_v28 }
  0x22   :  { %v42_v32 = vsel %vm41_vm0, %v39_v24, %v36_v30 }
  0x23   :  { %v51_v33 = vsel %vm50_vm1, %v48_v27, %v45_v31  ;;  %v52_v34 = vadd.f32 %v42_v32, %v24_v26 }
  0x24   :  { %v53_v35 = vadd.f32 %v51_v33, %v25_v29 }
  0x26   :  { %v62_v36 = vadd.f32 %v53_v35, %v52_v34 }
  0x28   :  { %85 = vst [vmem:[%s130_s2] sm:$0xff] %v62_v36 }

</bundles_post_ra>
